<compile_context>
chip_gen: v7x
topology: tpu7x:2x2x1
jax: 0.10.0
libtpu: 0.0.40
codegen_flags: <defaults>
</compile_context>

<pallas_src>
import functools

import jax
import jax.numpy as jnp
from jax.experimental import pallas as pl
from jax.experimental.pallas import tpu as pltpu


def _lse_kernel(logits_ref, out_ref, m_ref, s_ref, *, c_total, tile_c):
    """Online (streaming) logsumexp over the class axis for one (TN, TC) tile."""
    c_idx = pl.program_id(1)
    n_c = pl.num_programs(1)

    @pl.when(c_idx == 0)
    def _init():
        m_ref[...] = jnp.full(m_ref.shape, -jnp.inf, dtype=m_ref.dtype)
        s_ref[...] = jnp.zeros(s_ref.shape, dtype=s_ref.dtype)

    x = logits_ref[...].astype(jnp.float32)            # (TN, TC), upcast in-VMEM

    def update(xv):
        tile_max = jnp.max(xv, axis=-1, keepdims=True)             # (TN, 1)
        m_new = jnp.maximum(m_ref[...], tile_max)
        s_ref[...] = s_ref[...] * jnp.exp(m_ref[...] - m_new) + jnp.sum(
            jnp.exp(xv - m_new), axis=-1, keepdims=True)
        m_ref[...] = m_new

    rem = c_total % tile_c                             # static Python constant
    if rem == 0:
        # Every C tile is full -> no out-of-range columns, no mask work at all.
        update(x)
    else:
        # Only the last C tile has columns past the true C; mask them with -inf so
        # they contribute exp() = 0.  pl.when keeps the masked path off every other
        # grid step; `rem` is static so the compare has a scalar RHS (no global iota).
        is_last = c_idx == n_c - 1

        @pl.when(c_idx != n_c - 1)
        def _full_tile():
            update(x)

        @pl.when(is_last)
        def _edge_tile():
            col = jax.lax.broadcasted_iota(jnp.int32, x.shape, 1)  # local column ids
            update(jnp.where(col < rem, x, -jnp.inf))

    @pl.when(c_idx == n_c - 1)
    def _finalize():
        out_ref[...] = m_ref[...] + jnp.log(s_ref[...])   # per-row logsumexp, f32


# Per-buffer cap on the logits DMA tile (in the source dtype).  Measured tile sweeps
# show ~1-2 MiB tiles already reach ~85% of HBM roofline; bigger tiles only blow the
# VMEM budget once the f32 intermediates are counted.
_TILE_CAP_BYTES = 2 * 1024 * 1024


def _choose_tiles(n, c, itemsize):
    """Pick (TN, TC) so one logits tile stays under _TILE_CAP_BYTES."""
    # Sublane granularity by dtype packing (f32: 8, bf16/f16: 16, int8/fp8: 32).
    sub = 8 if itemsize >= 4 else (16 if itemsize == 2 else 32)

    # Prefer full rows (TC = C): contiguous DMAs and fewer grid steps.  Otherwise
    # stream the class axis with a large multiple-of-128 tile.
    if sub * c * itemsize <= _TILE_CAP_BYTES:
        tc = c
    else:
        tc = max(128, (_TILE_CAP_BYTES // (sub * itemsize)) // 128 * 128)
        tc = min(tc, c)

    # Rows per tile under the cap (multiple of the sublane pack).
    tn = max(sub, (_TILE_CAP_BYTES // (tc * itemsize)) // sub * sub)

    # Megacore: guarantee >=2 tiles on the "parallel" batch axis when N allows, so
    # both v7x TensorCores get work; the extra grid step is noise on v5e/v6e.
    if n > sub:
        tn = min(tn, max(sub, (((n + 1) // 2) // sub) * sub))

    if n <= tn:
        tn = n
    return tn, tc


def _vmem_limit_bytes(tn, tc, itemsize):
    """Scoped-VMEM limit: 2 DMA buffers + ~3 full-tile f32 intermediates + slack."""
    est = 2 * tn * tc * itemsize + 3 * tn * tc * 4 + 256 * 1024
    cap = 64 * 1024 * 1024                        # v7x-safe fallback (64 MiB VMEM)
    try:
        cap = int(pltpu.get_tpu_info().vmem_capacity_bytes)
    except Exception:
        pass
    return int(min(max(est * 3 // 2, 16 * 1024 * 1024), cap // 2))


def cross_entropy_loss(logits, targets, *, tile_n=None, tile_c=None):
    """logits: (N, C) float; targets: (N,) integer class indices. Returns scalar f32.

    Equivalent to nn.CrossEntropyLoss() with mean reduction (no label smoothing,
    no class weights; all targets must be valid class indices).
    """
    n, c = logits.shape
    itemsize = jnp.dtype(logits.dtype).itemsize
    tn, tc = _choose_tiles(n, c, itemsize)
    if tile_n is not None:
        tn = tile_n
    if tile_c is not None:
        tc = tile_c

    grid = (pl.cdiv(n, tn), pl.cdiv(c, tc))

    lse = pl.pallas_call(
        functools.partial(_lse_kernel, c_total=c, tile_c=tc),
        out_shape=jax.ShapeDtypeStruct((n, 1), jnp.float32),
        grid=grid,
        in_specs=[
            # NOTE: if xprof ever shows exposed per-step DMA on v7x, add
            # pipeline_mode=pl.Buffered(3) here (a 3rd ~2 MiB buffer is cheap).
            pl.BlockSpec((tn, tc), lambda i, j: (i, j)),   # logits: stream rows & classes
        ],
        out_specs=pl.BlockSpec((tn, 1), lambda i, j: (i, 0)),
        scratch_shapes=[pltpu.VMEM((tn, 1), jnp.float32)] * 2,  # running max, sum-exp
        compiler_params=pltpu.CompilerParams(
            dimension_semantics=("parallel", "arbitrary"),
            vmem_limit_bytes=_vmem_limit_bytes(tn, tc, itemsize),
        ),
        cost_estimate=pl.CostEstimate(
            flops=5 * n * c,                       # max/cmp/sub/mul/add per element
            transcendentals=n * c,                 # one exp per logit
            bytes_accessed=n * c * itemsize + n * 4,
        ),
    )(logits)

    # Target-logit pick hoisted out of the streaming loop: an N-element gather in
    # XLA (reads only N logits), then the mean (divide by the true N exactly once).
    t2d = targets.astype(jnp.int32).reshape(n, 1)
    picked = jnp.take_along_axis(logits, t2d, axis=-1).astype(jnp.float32)  # (N, 1)

    # TODO(synk): nn.CrossEntropyLoss extras (ignore_index=-100, label_smoothing,
    # class weights) are not handled; targets must be valid class indices.
    return jnp.sum(lse - picked) / n


if __name__ == "__main__":
    key = jax.random.PRNGKey(0)
    k_logits, k_tgt = jax.random.split(key)

    # Small synthetic shapes consistent with the module: batch=8, num_classes=32.
    N, C = 8, 32
    logits = jax.random.normal(k_logits, (N, C), dtype=jnp.float32)
    targets = jax.random.randint(k_tgt, (N,), 0, C, dtype=jnp.int32)

    def ref_ce(lg, tg):
        lg32 = lg.astype(jnp.float32)
        return jnp.mean(
            jax.nn.logsumexp(lg32, axis=-1) - lg32[jnp.arange(lg32.shape[0]), tg]
        )

    # 1) Single-tile path (whole problem fits one block, C % TC == 0 -> unmasked path).
    loss_val = cross_entropy_loss(logits, targets)
    jax.block_until_ready(loss_val)
    assert jnp.allclose(loss_val, ref_ce(logits, targets), atol=1e-5, rtol=1e-5), loss_val

    # 2) Forced tiling: exercises the grid, partial tiles (N % TN != 0, C % TC != 0),
    #    the edge-tile -inf mask, and the online-logsumexp C streaming.
    N2, C2 = 20, 160
    k1, k2 = jax.random.split(jax.random.PRNGKey(0), 2)
    logits2 = jax.random.normal(k1, (N2, C2), dtype=jnp.float32)
    targets2 = jax.random.randint(k2, (N2,), 0, C2, dtype=jnp.int32)
    loss2 = cross_entropy_loss(logits2, targets2, tile_n=8, tile_c=128)
    jax.block_until_ready(loss2)
    assert jnp.allclose(loss2, ref_ce(logits2, targets2), atol=1e-5, rtol=1e-5), loss2

    # 3) bf16 logits stay bf16 through the DMA and are upcast in-kernel.
    loss3 = cross_entropy_loss(logits.astype(jnp.bfloat16), targets)
    jax.block_until_ready(loss3)
    assert jnp.allclose(loss3, ref_ce(logits.astype(jnp.bfloat16), targets),
                        atol=2e-2, rtol=2e-2), loss3

    print("KERNEL_OK")
</pallas_src>

<mosaic_0001>
module attributes {stable_mosaic.version = 11 : i64} {
  func.func @_lse_kernel(%arg0: i32, %arg1: i32, %arg2: memref<8x32xf32, #tpu.memory_space<vmem>>, %arg3: memref<8x1xf32, #tpu.memory_space<vmem>>, %arg4: memref<8x1xf32, #tpu.memory_space<vmem>>, %arg5: memref<8x1xf32, #tpu.memory_space<vmem>>) attributes {dimension_semantics = [#tpu.dimension_semantics<parallel>, #tpu.dimension_semantics<arbitrary>], iteration_bounds = array<i64: 1, 1>, scalar_prefetch = 0 : i64, scratch_operands = 2 : i64, tpu.core_type = #tpu.core_type<tc>, window_params = [{transform_indices = @transform_0, window_bounds = array<i64: 8, 32>}, {transform_indices = @transform_1, window_bounds = array<i64: 8, 1>}]} {
    %c0_i32 = arith.constant 0 : i32
    %0 = arith.cmpi eq, %arg1, %c0_i32 : i32
    %1 = arith.extui %0 : i1 to i32
    %c0_i32_0 = arith.constant 0 : i32
    %2 = arith.cmpi ne, %1, %c0_i32_0 : i32
    scf.if %2 {
      %cst_15 = arith.constant 0xFF800000 : f32
      %24 = vector.broadcast %cst_15 : f32 to vector<8x1xf32>
      %c0_16 = arith.constant 0 : index
      %c0_17 = arith.constant 0 : index
      %25 = vector.load %arg4[%c0_16, %c0_17] : memref<8x1xf32, #tpu.memory_space<vmem>>, vector<8x1xf32>
      tpu.vector_store %arg4[%c0_16, %c0_17], %24 {strides = array<i32>} : memref<8x1xf32, #tpu.memory_space<vmem>>, vector<8x1xf32>,
      %cst_18 = arith.constant 0.000000e+00 : f32
      %26 = vector.broadcast %cst_18 : f32 to vector<8x1xf32>
      %c0_19 = arith.constant 0 : index
      %c0_20 = arith.constant 0 : index
      %27 = vector.load %arg5[%c0_19, %c0_20] : memref<8x1xf32, #tpu.memory_space<vmem>>, vector<8x1xf32>
      tpu.vector_store %arg5[%c0_19, %c0_20], %26 {strides = array<i32>} : memref<8x1xf32, #tpu.memory_space<vmem>>, vector<8x1xf32>,
    } else {
    }
    %c0 = arith.constant 0 : index
    %c0_1 = arith.constant 0 : index
    %3 = vector.load %arg2[%c0, %c0_1] : memref<8x32xf32, #tpu.memory_space<vmem>>, vector<8x32xf32>
    %cst = arith.constant dense<0xFF800000> : vector<8xf32>
    %4 = vector.multi_reduction <maximumf>, %3, %cst [1] : vector<8x32xf32> to vector<8xf32>
    %5 = vector.shape_cast %4 : vector<8xf32> to vector<8x1xf32>
    %c0_2 = arith.constant 0 : index
    %c0_3 = arith.constant 0 : index
    %6 = vector.load %arg4[%c0_2, %c0_3] : memref<8x1xf32, #tpu.memory_space<vmem>>, vector<8x1xf32>
    %7 = arith.maximumf %6, %5 : vector<8x1xf32>
    %c0_4 = arith.constant 0 : index
    %c0_5 = arith.constant 0 : index
    %8 = vector.load %arg5[%c0_4, %c0_5] : memref<8x1xf32, #tpu.memory_space<vmem>>, vector<8x1xf32>
    %c0_6 = arith.constant 0 : index
    %c0_7 = arith.constant 0 : index
    %9 = vector.load %arg4[%c0_6, %c0_7] : memref<8x1xf32, #tpu.memory_space<vmem>>, vector<8x1xf32>
    %10 = arith.subf %9, %7 : vector<8x1xf32>
    %11 = math.exp %10 : vector<8x1xf32>
    %12 = arith.mulf %8, %11 : vector<8x1xf32>
    %13 = vector.broadcast %7 : vector<8x1xf32> to vector<8x32xf32>
    %14 = arith.subf %3, %13 : vector<8x32xf32>
    %15 = math.exp %14 : vector<8x32xf32>
    %cst_8 = arith.constant dense<0.000000e+00> : vector<8xf32>
    %16 = vector.multi_reduction <add>, %15, %cst_8 [1] : vector<8x32xf32> to vector<8xf32>
    %17 = vector.shape_cast %16 : vector<8xf32> to vector<8x1xf32>
    %18 = arith.addf %12, %17 : vector<8x1xf32>
    %c0_9 = arith.constant 0 : index
    %c0_10 = arith.constant 0 : index
    %19 = vector.load %arg5[%c0_9, %c0_10] : memref<8x1xf32, #tpu.memory_space<vmem>>, vector<8x1xf32>
    tpu.vector_store %arg5[%c0_9, %c0_10], %18 {strides = array<i32>} : memref<8x1xf32, #tpu.memory_space<vmem>>, vector<8x1xf32>,
    %c0_11 = arith.constant 0 : index
    %c0_12 = arith.constant 0 : index
    %20 = vector.load %arg4[%c0_11, %c0_12] : memref<8x1xf32, #tpu.memory_space<vmem>>, vector<8x1xf32>
    tpu.vector_store %arg4[%c0_11, %c0_12], %7 {strides = array<i32>} : memref<8x1xf32, #tpu.memory_space<vmem>>, vector<8x1xf32>,
    %c0_i32_13 = arith.constant 0 : i32
    %21 = arith.cmpi eq, %arg1, %c0_i32_13 : i32
    %22 = arith.extui %21 : i1 to i32
    %c0_i32_14 = arith.constant 0 : i32
    %23 = arith.cmpi ne, %22, %c0_i32_14 : i32
    scf.if %23 {
      %c0_15 = arith.constant 0 : index
      %c0_16 = arith.constant 0 : index
      %24 = vector.load %arg4[%c0_15, %c0_16] : memref<8x1xf32, #tpu.memory_space<vmem>>, vector<8x1xf32>
      %c0_17 = arith.constant 0 : index
      %c0_18 = arith.constant 0 : index
      %25 = vector.load %arg5[%c0_17, %c0_18] : memref<8x1xf32, #tpu.memory_space<vmem>>, vector<8x1xf32>
      %26 = math.log %25 : vector<8x1xf32>
      %27 = arith.addf %24, %26 : vector<8x1xf32>
      %c0_19 = arith.constant 0 : index
      %c0_20 = arith.constant 0 : index
      %28 = vector.load %arg3[%c0_19, %c0_20] : memref<8x1xf32, #tpu.memory_space<vmem>>, vector<8x1xf32>
      tpu.vector_store %arg3[%c0_19, %c0_20], %27 {strides = array<i32>} : memref<8x1xf32, #tpu.memory_space<vmem>>, vector<8x1xf32>,
    } else {
    }
    return
  }
  func.func @transform_0(%arg0: i32, %arg1: i32) -> (i32, i32) {
    %c0_i32 = arith.constant 0 : i32
    return %arg0, %arg1 : i32, i32
  }
  func.func @transform_1(%arg0: i32, %arg1: i32) -> (i32, i32) {
    %c0_i32 = arith.constant 0 : i32
    %c0_i32_0 = arith.constant 0 : i32
    return %arg0, %c0_i32 : i32, i32
  }
}

</mosaic_0001>

<bundles_post_ra>
// kernel: tpu_custom_call.1
= control target key start
LH: loop header
LB: loop body
LE: loop exit
PB: predicated region body
PF: predicated region fallthrough
CT: control target
= control target key end

     0   :  { %6 = vsyncpa [#allocation5], 0  ;;  %s103_s6 = smov [#allocation4]   ;;  %s139_s0 = inlined_call_operand.hbm [shape: f32[8,32], index: 0, kind: input, shape index: {}]   ;;  %s140_s1 = inlined_call_operand.vmem [shape: f32[8,1], index: 1, kind: output, shape index: {}]  }
   0x1   :  { %s13_s7 = sshll.u32 %s103_s6, 4  ;;  %s79_s10 = scalar_lea.hbm %s139_s0, 128  ;;  %s14_s7 = int_to_ptr.vmem [resolvable:$true] %s13_s7 }
   0x2   :  { %p80_p0 = scmp.ne.s32.totalorder %s139_s0, %s79_s10  ;;  %p83_p1 = scmp.lt.u32.totalorder %s79_s10, %s139_s0 }
   0x4   :  { %p85_p2 = pnand %p83_p1, %p80_p0 }
   0x6   :  { %88 = shalt.err (!%p85_p2)
}
   0x7   :  { %s89_s15 = scalar_lea.vmem %s14_s7, 128  ;;  %p94_p4 = scmp.lt.s32.totalorder %s14_s7, %s14_s7 }
   0x8   :  { %p90_p3 = scmp.ne.s32.totalorder %s14_s7, %s89_s15  ;;  %p95_p5 = scmp.lt.s32.totalorder %s89_s15, %s89_s15 }
   0xa   :  { %p96_p6 = por %p95_p5, %p94_p4 }
   0xc   :  { %p97_p7 = pnand %p96_p6, %p90_p3 }
   0xe   :  { %100 = shalt.err (!%p97_p7)
}
   0xf   :  { %16 = dma.hbm_to_vmem [thread:$0]  %s139_s0, 128, %s14_s7, [#allocation5]  }
  0x10   :  { %101 = dma.done.wait [#allocation5], 128  }
  0x11   :  { %102 = vsyncadd [#allocation5], 4294967168  ;;  %vm24_vm0 = vcmask 7168   ;;  %v104_v0 = vmov -inf   ;;  %vm28_vm1 = vcmask 261120   ;;  %v27_v1 = vld [vmem:[#allocation4] sm:$0xff] }
  0x12   :  { %25 = vst.msk [vmem:[#allocation2] sm:$0xff] %vm24_vm0, %v104_v0  ;;  %v29_v2 = vsel %vm28_vm1, %v27_v1, -inf  ;;  %v105_v3 = vmov 0   ;;  %v106_v4 = vmov 0.0  }
  0x13   :  { %30 = vmax.xlane.f32.xlu0 %v29_v2  ;;  %26 = vst.msk [vmem:[#allocation3] sm:$0xff] %vm24_vm0, %v106_v4 }
  0x14   :  { %72 = vset.pattern.permute.xlu0 %v105_v3 }
  0x19   :  { %v32_v5 = vld [vmem:[#allocation2] sm:$0xff] }
  0x1a   :  { %v34_v16 = vld [vmem:[#allocation3] sm:$0xff] }
  0xa0   :  { %v31_v6 = vpop.xlane.xlu0 %30 }
  0xa1   :  { %v33_v7 = vmax.f32 %v32_v5, %v31_v6 }
  0xa3   :  { %v35_v8 = vsub.f32 %v32_v5, %v33_v7  ;;  %53 = vst.msk [vmem:[#allocation2] sm:$0xff] %vm24_vm0, %v33_v7  ;;  %41 = vperm.xlu0 %72, %v33_v7  }
  0xa5   :  { %v36_v14 = vmul.f32 1.442695, %v35_v8 }
  0xaa   :  { %v57_v23 = vld [vmem:[#allocation2] sm:$0xff] }
 0x122   :  { %v42_v9 = vpop.permute.xlu0 %41 }
 0x123   :  { %v44_v10 = vsub.f32 %v27_v1, %v42_v9 }
 0x125   :  { %v45_v11 = vmul.f32 1.442695, %v44_v10 }
 0x127   :  { %73 = vpow2.f32 %v45_v11 }
 0x128   :  { %75 = vpow2.f32 %v36_v14 }
 0x131   :  { %v74_v12 = vpop.eup %73 }
 0x132   :  { %v47_v13 = vsel %vm28_vm1, %v74_v12, 0.0  ;;  %v76_v15 = vpop.eup %75 }
 0x133   :  { %48 = vadd.xlane.f32.xlu1 %v47_v13  ;;  %v38_v17 = vmul.f32 %v76_v15, %v34_v16 }
 0x1c0   :  { %v49_v18 = vpop.xlane.xlu1 %48 }
 0x1c1   :  { %v50_v19 = vadd.f32 %v49_v18, %v38_v17 }
 0x1c3   :  { %52 = vst.msk [vmem:[#allocation3] sm:$0xff] %vm24_vm0, %v50_v19 }
 0x1ca   :  { %v58_v20 = vld [vmem:[#allocation3] sm:$0xff] }
 0x1cb   :  { %77 = vlog2.f32 %v58_v20 }
 0x1d5   :  { %v78_v21 = vpop.eup %77 }
 0x1d6   :  { %v60_v22 = vmul.f32 0.6931472, %v78_v21 }
 0x1d8   :  { %v61_v24 = vadd.f32 %v60_v22, %v57_v23 }
 0x1da   :  { %62 = vst.msk [vmem:[%s140_s1] sm:$0xff] %vm24_vm0, %v61_v24 }
 0x1db   :  { %67 = vsyncpa [#allocation5], 1 }

</bundles_post_ra>
